<compile_context>
chip_gen: v6e
topology: v6e:2x2x1
jax: 0.10.0
libtpu: 0.0.40
codegen_flags: <defaults>
</compile_context>

<pallas_src>
import jax
import jax.numpy as jnp
from jax.experimental import pallas as pl
from jax.experimental.pallas import tpu as pltpu

LANE = 128
SUBLANE = 8
_ALIGN = SUBLANE * LANE  # 1024 elements -> rows % 8 == 0 after padding


def _mish_kernel(x_ref, o_ref):
    x = x_ref[...].astype(jnp.float32)
    # Single-exp rewrite of tanh(softplus(x)); d = exp(-|x|) never overflows.
    d = jnp.exp(-jnp.abs(x))
    d2 = d * d
    pos = x > 0.0
    num = jnp.where(pos, 1.0 + 2.0 * d, d2 + 2.0 * d)
    den = num + jnp.where(pos, 2.0 * d2, 2.0)          # den in (1, 5]
    # EUP approx reciprocal + one Newton refinement (VPU) -> ~1e-6 rel error.
    r = pl.reciprocal(den, approx=True)
    r = r * (2.0 - den * r)
    o_ref[...] = (x * num * r).astype(o_ref.dtype)


def _choose_tile_rows(rows, requested):
    tr = min(requested, rows)
    tr = max(SUBLANE, (tr // SUBLANE) * SUBLANE)
    # Keep at least 2 grid steps (v7x has 2 TensorCores) when data allows.
    if rows >= 2 * SUBLANE and pl.cdiv(rows, tr) < 2:
        tr = max(SUBLANE, pl.cdiv(pl.cdiv(rows, 2), SUBLANE) * SUBLANE)
    return tr


def mish(x, *, tile_rows=2048):
    """Elementwise Mish via Pallas. Accepts any shape / float dtype (NCHW etc.)."""
    orig_shape = x.shape
    orig_dtype = x.dtype
    n = x.size
    if n == 0:
        return x

    flat = x.reshape(-1)
    # Minimal padding: only up to the (8, 128) alignment, fast path skips it.
    n_pad = pl.cdiv(n, _ALIGN) * _ALIGN
    padded = n_pad != n
    if padded:
        flat = jnp.pad(flat, (0, n_pad - n))
    x2d = flat.reshape(-1, LANE)
    rows = x2d.shape[0]

    tr = _choose_tile_rows(rows, tile_rows)
    grid = (pl.cdiv(rows, tr),)

    itemsize = jnp.dtype(orig_dtype).itemsize
    cost = pl.CostEstimate(
        flops=12 * n,                 # muls/adds/selects per element
        transcendentals=2 * n,        # 1 exp + 1 approx reciprocal
        bytes_accessed=2 * n * itemsize,
    )

    out2d = pl.pallas_call(
        _mish_kernel,
        out_shape=jax.ShapeDtypeStruct((rows, LANE), orig_dtype),
        grid_spec=pltpu.PrefetchScalarGridSpec(
            num_scalar_prefetch=0,
            grid=grid,
            in_specs=[pl.BlockSpec((tr, LANE), lambda i: (i, 0))],
            out_specs=pl.BlockSpec((tr, LANE), lambda i: (i, 0)),
        ),
        compiler_params=pltpu.CompilerParams(
            dimension_semantics=("parallel",),
        ),
        cost_estimate=cost,
    )(x2d)

    out = out2d.reshape(-1)
    if padded:
        out = out[:n]
    return out.reshape(orig_shape)


def _mish_ref(x):
    xf = x.astype(jnp.float32)
    return (xf * jnp.tanh(jax.nn.softplus(xf))).astype(x.dtype)


if __name__ == "__main__":
    k1, k2 = jax.random.split(jax.random.PRNGKey(0))

    # NCHW activation tensor, aligned size -> no-pad fast path.
    x = jax.random.normal(k1, (2, 4, 16, 16), dtype=jnp.float32)
    y = mish(x)
    jax.block_until_ready(y)
    y_ref = _mish_ref(x)
    assert y.shape == x.shape and y.dtype == x.dtype
    assert jnp.allclose(y, y_ref, atol=1e-5, rtol=1e-5)

    # Ragged size -> exercises the minimal-pad path and tail slice.
    x2 = jax.random.normal(k2, (2, 3, 5, 7), dtype=jnp.float32)
    y2 = mish(x2)
    jax.block_until_ready(y2)
    assert jnp.allclose(y2, _mish_ref(x2), atol=1e-5, rtol=1e-5)

    print("KERNEL_OK")
</pallas_src>

<mosaic_0001>
module attributes {stable_mosaic.version = 11 : i64} {
  func.func @_mish_kernel(%arg0: i32, %arg1: memref<8x128xf32, #tpu.memory_space<vmem>>, %arg2: memref<8x128xf32, #tpu.memory_space<vmem>>) attributes {dimension_semantics = [#tpu.dimension_semantics<parallel>], iteration_bounds = array<i64: 2>, scalar_prefetch = 0 : i64, scratch_operands = 0 : i64, tpu.core_type = #tpu.core_type<tc>, window_params = [{transform_indices = @transform_0, window_bounds = array<i64: 8, 128>}, {transform_indices = @transform_1, window_bounds = array<i64: 8, 128>}]} {
    %c0 = arith.constant 0 : index
    %c0_0 = arith.constant 0 : index
    %0 = vector.load %arg1[%c0, %c0_0] : memref<8x128xf32, #tpu.memory_space<vmem>>, vector<8x128xf32>
    %1 = math.absf %0 : vector<8x128xf32>
    %cst = arith.constant 0.000000e+00 : f32
    %2 = vector.broadcast %cst : f32 to vector<8x128xf32>
    %3 = arith.subf %2, %1 : vector<8x128xf32>
    %4 = math.exp %3 : vector<8x128xf32>
    %5 = arith.mulf %4, %4 : vector<8x128xf32>
    %cst_1 = arith.constant 0.000000e+00 : f32
    %6 = vector.broadcast %cst_1 : f32 to vector<8x128xf32>
    %7 = arith.cmpf ogt, %0, %6 : vector<8x128xf32>
    %cst_2 = arith.constant 2.000000e+00 : f32
    %8 = vector.broadcast %cst_2 : f32 to vector<8x128xf32>
    %9 = arith.mulf %8, %4 : vector<8x128xf32>
    %cst_3 = arith.constant 1.000000e+00 : f32
    %10 = vector.broadcast %cst_3 : f32 to vector<8x128xf32>
    %11 = arith.addf %10, %9 : vector<8x128xf32>
    %cst_4 = arith.constant 2.000000e+00 : f32
    %12 = vector.broadcast %cst_4 : f32 to vector<8x128xf32>
    %13 = arith.mulf %12, %4 : vector<8x128xf32>
    %14 = arith.addf %5, %13 : vector<8x128xf32>
    %15 = arith.select %7, %11, %14 : vector<8x128xi1>, vector<8x128xf32>
    %cst_5 = arith.constant 2.000000e+00 : f32
    %16 = vector.broadcast %cst_5 : f32 to vector<8x128xf32>
    %17 = arith.mulf %16, %5 : vector<8x128xf32>
    %cst_6 = arith.constant 2.000000e+00 : f32
    %18 = vector.broadcast %cst_6 : f32 to vector<8x128xf32>
    %19 = arith.select %7, %17, %18 : vector<8x128xi1>, vector<8x128xf32>
    %20 = arith.addf %15, %19 : vector<8x128xf32>
    %21 = tpu.reciprocal %20 {approx = true} : vector<8x128xf32> -> vector<8x128xf32>
    %22 = arith.mulf %20, %21 : vector<8x128xf32>
    %cst_7 = arith.constant 2.000000e+00 : f32
    %23 = vector.broadcast %cst_7 : f32 to vector<8x128xf32>
    %24 = arith.subf %23, %22 : vector<8x128xf32>
    %25 = arith.mulf %21, %24 : vector<8x128xf32>
    %26 = arith.mulf %0, %15 : vector<8x128xf32>
    %27 = arith.mulf %26, %25 : vector<8x128xf32>
    %c0_8 = arith.constant 0 : index
    %c0_9 = arith.constant 0 : index
    %28 = vector.load %arg2[%c0_8, %c0_9] : memref<8x128xf32, #tpu.memory_space<vmem>>, vector<8x128xf32>
    tpu.vector_store %arg2[%c0_8, %c0_9], %27 {strides = array<i32>} : memref<8x128xf32, #tpu.memory_space<vmem>>, vector<8x128xf32>,
    return
  }
  func.func @transform_0(%arg0: i32) -> (i32, i32) {
    %c0_i32 = arith.constant 0 : i32
    %c0_i32_0 = arith.constant 0 : i32
    return %arg0, %c0_i32 : i32, i32
  }
  func.func @transform_1(%arg0: i32) -> (i32, i32) {
    %c0_i32 = arith.constant 0 : i32
    %c0_i32_0 = arith.constant 0 : i32
    return %arg0, %c0_i32 : i32, i32
  }
}

</mosaic_0001>

<bundles_post_ra>
// kernel: tpu_custom_call.1
= control target key start
LH: loop header
LB: loop body
LE: loop exit
PB: predicated region body
PF: predicated region fallthrough
CT: control target
= control target key end

     0   :  { %6 = vsyncpa [#allocation3], 0  ;;  %s546_s0 = inlined_call_operand.hbm [shape: f32[16,128], index: 0, kind: input, shape index: {}]   ;;  %s547_s1 = inlined_call_operand.hbm [shape: f32[16,128], index: 1, kind: output, shape index: {}]  }
   0x1   :  { %8 = vsyncpa [#allocation3 + $0x1], 0 }
   0x2   :  { %9 = vsyncpa [#allocation4], 0 }
   0x3   :  { %11 = vsyncpa [#allocation4 + $0x1], 0  ;;  %s405_s6 = smov 0   ;;  %s407_s7 = smov 0  }
   0x4   :  { %s409_s8 = smov 0   ;;  %s411_s9 = smov 0  }
   0x5 LB: > { %s426_s10 = sadd.s32 4294967295, %s391_s9   ;;  %s237_s11 = sadd.s32 4294967294, %s391_s9   ;;  %s391_s9 = sphi %s411_s9, %s564_s9   ;;  %s387_s8 = sphi %s409_s8, %s563_s8   ;;  %s383_s7 = sphi %s407_s7, %s562_s7   ;;  %s379_s6 = sphi %s405_s6, %s561_s6  }
   0x6   : > { %s430_s12 = sadd.s32 1, %s391_s9   ;;  %s24_s13 = sadd.s32 1, %s387_s8 }
   0x7   : > { %s21_s14 = ssub.s32 %s391_s9, %s430_s12  ;;  %p31_p0 = scmp.ne.s32.totalorder %s387_s8, %s383_s7 }
   0x8   : > { %p22_p1 = scmp.eq.s32.totalorder %s21_s14, 0  ;;  %p32_p2 = scmp.eq.s32.totalorder %s391_s9, 0 }
   0x9   : > { %p37_p3 = scmp.ne.s32.totalorder %s383_s7, %s379_s6  ;;  %p38_p4 = scmp.eq.s32.totalorder %s426_s10, 0 }
   0xa   : > { %s442_s15 = scalar_select %p22_p1, %s387_s8, %s24_s13  }
   0xb   : > { %p444_p5 = por %p32_p2, %p31_p0  ;;  %p448_p6 = por %p38_p4, %p37_p3 }
   0xc   : > { %p61_p7 = scmp.eq.s32.totalorder %s426_s10, 1  ;;  %p67_p8 = scmp.eq.s32.totalorder %s237_s11, 1 }
   0xd   : > { %s551_s17 = scalar_select %p448_p6, 1, 0 }
   0xe   : > { %p261_p10 = scmp.lt.s32.totalorder %s391_s9, 2  ;;  %p455_p11 = por %p61_p7, %p31_p0 }
   0xf   : > { %p459_p12 = por %p67_p8, %p37_p3  ;;  %s87_s20 = sand.u32 1, %s387_s8  }
  0x10   : > { %s552_s18 = scalar_select %p455_p11, 1, 0 }
  0x11   : > { %s553_s19 = scalar_select %p459_p12, 1, 0 }
  0x12   : > { %s241_s21 = sshll.u32 %s391_s9, 7  ;;  %s240_s22 = sshll.u32 %s87_s20, 3 }
  0x13   : > { %s468_s25 = scalar_lea.hbm %s546_s0, %s241_s21  ;;  %s91_s26 = scalar_lea.vmem [#allocation2], %s240_s22 }
  0x14   : > { %s98_s27 = sshll.u32 %s91_s26, 4  ;;  %p472_p13 = pnand %p261_p10, %p444_p5  ;;  %s476_s27 = int_to_ptr.vmem [resolvable:$true] %s98_s27 }
  0x15   : > { %s88_s29 = scalar_lea.sflag [#allocation3], %s87_s20  ;;  %s299_s30 = scalar_lea.hbm %s468_s25, 128 }
  0x16   : > { %p300_p2 = scmp.ne.s32.totalorder %s468_s25, %s299_s30  ;;  %p301_p3 = pneg %p472_p13 }
  0x17   : > { %s304_s4 = scalar_lea.hbm %s546_s0, 256  ;;  %p305_p5 = scmp.lt.s32.totalorder %s468_s25, %s546_s0 }
  0x18   : > { %p302_p4 = pnand %p301_p3, %p300_p2  ;;  %p306_p8 = scmp.lt.s32.totalorder %s304_s4, %s299_s30 }
  0x1a   : > { %p303_p7 = pneg %p302_p4  ;;  %p307_p10 = por %p306_p8, %p305_p5 }
  0x1c   : > { %p308_p9 = pnand %p307_p10, %p303_p7 }
  0x1e   : > { %311 = shalt.err (!%p308_p9)
}
  0x1f   : > { %s312_s13 = scalar_lea.vmem %s476_s27, 128  ;;  %s393_s14 = smov [#allocation2]  }
  0x20   : > { %p313_p0 = scmp.ne.s32.totalorder %s476_s27, %s312_s13  ;;  %s317_s16 = sshll.u32 %s393_s14, 4  ;;  %s318_s16 = int_to_ptr.vmem [resolvable:$false] %s317_s16 }
  0x21   : > { %s319_s20 = scalar_lea.vmem %s318_s16, 256  ;;  %p320_p4 = scmp.lt.s32.totalorder %s476_s27, %s318_s16 }
  0x22   : > { %p315_p1 = pnand %p313_p0, %p301_p3  ;;  %p321_p12 = scmp.lt.s32.totalorder %s319_s20, %s312_s13 }
  0x24   : > { %p316_p2 = pneg %p315_p1  ;;  %p322_p11 = por %p321_p12, %p320_p4 }
  0x26   : > { %p323_p6 = pnand %p322_p11, %p316_p2 }
  0x28   : > { %326 = shalt.err (!%p323_p6)
}
  0x29   : > { %256 = dma.hbm_to_vmem [thread:$0]  (!%p472_p13), %s468_s25, 128, %s476_s27, %s88_s29  }
  0x2a   : > { %p555_p9 = scmp.lt.s32.totalorder %s391_s9, 3  ;;  %p556_p7 = scmp.ge.s32.totalorder %s391_s9, 1 }
  0x2c   : > { %p104_p0 = pnand %p556_p7, %p555_p9 }
  0x2d   : > { %s503_s21 = sand.u32 (!%p104_p0), 1, %s383_s7   ;;  %p557_p6 = scmp.ne.s32.totalorder (!%p104_p0), %s551_s17, 0 }
  0x2e   : > { %107 = sbr.rel (%p104_p0) target bundleno = 115 (0x73), region = 24  ;;  %s243_s22 = sshll.u32 (!%p104_p0), %s503_s21, 3 }
  0x2f   : > { %s110_s23 = scalar_lea.sflag (!%p104_p0), [#allocation3], %s503_s21  ;;  %s113_s24 = scalar_lea.vmem (!%p104_p0), [#allocation2], %s243_s22 }
  0x33   : > { %370 = dma.done.wait (%p557_p6), %s110_s23, 128  }
  0x34   : > { %372 = vsyncadd (%p557_p6), %s110_s23, 4294967168  ;;  %v132_v0 = vld [vmem:[%s113_s24] sm:$0xff]  ;;  %s131_s17 = scalar_lea.vmem [#allocation5], %s243_s22  ;;  %s246_s26 = sshll.u32 %s426_s10, 7 }
  0x35   : > { %v133_v1 = vand.u32 2147483647, %v132_v0  ;;  %vm138_vm0 = vcmp.gt.f32.partialorder %v132_v0, 0.0  ;;  %s167_s25 = sshll.u32 %s131_s17, 4  ;;  %s165_s29 = scalar_lea.hbm %s547_s1, %s246_s26  ;;  %s168_s25 = int_to_ptr.vmem [resolvable:$true] %s167_s25 }
  0x36   : > { %s154_s30 = scalar_lea.sflag [#allocation4], %s503_s21  ;;  %s327_s2 = scalar_lea.vmem %s168_s25, 128 }
  0x37   : > { %v134_v2 = vsub.f32 0.0, %v133_v1  ;;  %p328_p11 = scmp.ne.s32.totalorder %s168_s25, %s327_s2  ;;  %p558_p12 = scmp.ne.s32.totalorder %s552_s18, 0 }
  0x38   : > { %s394_s3 = smov [#allocation5]  }
  0x39   : > { %v135_v3 = vmul.f32 1.442695, %v134_v2  ;;  %p329_p13 = pnand %p328_p11, %p558_p12  ;;  %s331_s4 = sshll.u32 %s394_s3, 4  ;;  %s332_s4 = int_to_ptr.vmem [resolvable:$false] %s331_s4 }
  0x3a   : > { %s333_s5 = scalar_lea.vmem %s332_s4, 256  ;;  %p334_p3 = scmp.lt.s32.totalorder %s168_s25, %s332_s4 }
  0x3b   : > { %295 = vpow2.f32 %v135_v3  ;;  %p330_p1 = pneg %p329_p13  ;;  %p335_p5 = scmp.lt.s32.totalorder %s333_s5, %s327_s2 }
  0x3d   : > { %p336_p8 = por %p335_p5, %p334_p3 }
  0x3f   : > { %p337_p10 = pnand %p336_p8, %p330_p1 }
  0x48   : > { %v296_v4 = vpop.eup %295 }
  0x49   : > { %v137_v5 = vmul.f32 %v296_v4, %v296_v4  ;;  %v139_v6 = vmul.f32 2.0, %v296_v4 }
  0x4b   : > { %v140_v7 = vadd.f32 1.0, %v139_v6  ;;  %v141_v8 = vadd.f32 %v139_v6, %v137_v5  ;;  %v143_v9 = vmul.f32 2.0, %v137_v5 }
  0x4d   : > { %v142_v10 = vsel %vm138_vm0, %v140_v7, %v141_v8  ;;  %v144_v11 = vsel %vm138_vm0, %v143_v9, 2.0 }
  0x4e   : > { %v145_v12 = vadd.f32 %v144_v11, %v142_v10  ;;  %v150_v16 = vmul.f32 %v142_v10, %v132_v0 }
  0x50   : > { %297 = vrcp.f32 %v145_v12 }
  0x5d   : > { %v298_v13 = vpop.eup %297 }
  0x5e   : > { %v147_v14 = vmul.f32 %v298_v13, %v145_v12 }
  0x60   : > { %v148_v15 = vsub.f32 2.0, %v147_v14 }
  0x62   : > { %v149_v17 = vmul.f32 %v298_v13, %v148_v15 }
  0x64   : > { %v151_v18 = vmul.f32 %v150_v16, %v149_v17 }
  0x66   : > { %152 = vst [vmem:[%s131_s17] sm:$0xff] %v151_v18 }
  0x67   : > { %340 = shalt.err (!%p337_p10)
}
  0x68   : > { %s341_s10 = scalar_lea.hbm %s165_s29, 128  ;;  %s345_s14 = scalar_lea.hbm %s547_s1, 256 }
  0x69   : > { %p342_p2 = scmp.ne.s32.totalorder %s165_s29, %s341_s10  ;;  %p346_p7 = scmp.lt.s32.totalorder %s165_s29, %s547_s1 }
  0x6a   : > { %p347_p0 = scmp.lt.s32.totalorder %s345_s14, %s341_s10 }
  0x6b   : > { %p343_p4 = pnand %p342_p2, %p558_p12 }
  0x6c   : > { %p348_p6 = por %p347_p0, %p346_p7 }
  0x6d   : > { %p344_p9 = pneg %p343_p4 }
  0x6f   : > { %p349_p11 = pnand %p348_p6, %p344_p9 }
  0x71   : > { %352 = shalt.err (!%p349_p11)
}
  0x72   : > { %251 = dma.vmem_to_hbm [thread:$0]  (%p558_p12), %s168_s25, 128, %s165_s29, %s154_s30  }
  0x73 PF: > { %s179_s21 = sand.u32 1, %s379_s6   ;;  %p559_p13 = scmp.ne.s32.totalorder %s553_s19, 0 }
  0x74   : > { %p560_p1 = scmp.ge.s32.totalorder %s391_s9, 2  ;;  %s180_s22 = scalar_lea.sflag [#allocation4], %s179_s21 }
  0x76   : > { %p258_p3 = pnand %p560_p1, %p559_p13 }
  0x78   : > { %p259_p5 = pneg %p258_p3 }
  0x7a   : > { %374 = dma.done.wait (%p259_p5), %s180_s22, 128  }
  0x7b   : > { %376 = vsyncadd (%p259_p5), %s180_s22, 4294967168  ;;  %p14_p8 = scmp.ge.s32.totalorder %s430_s12, 4   ;;  %s561_s6 = smov %s383_s7 }
  0x7c   : > { %s562_s7 = smov %s387_s8  ;;  %s563_s8 = smov %s442_s15 }
  0x7d   : > { %s564_s9 = smov %s430_s12  ;;  %16 = sbr.rel (!%p14_p8) target bundleno = 5 (0x5), region = 69 }
  0x82   :  { %185 = vsyncpa [#allocation3], 1 }
  0x83   :  { %187 = vsyncpa [#allocation3 + $0x1], 1 }
  0x84   :  { %188 = vsyncpa [#allocation4], 1 }
  0x85   :  { %190 = vsyncpa [#allocation4 + $0x1], 1 }

</bundles_post_ra>
